<compile_context>
chip_gen: v7x
topology: tpu7x:2x2x1
jax: 0.10.0
libtpu: 0.0.40
codegen_flags: <defaults>
</compile_context>

<pallas_src>
import functools

import numpy as np
import jax
import jax.numpy as jnp
from jax import lax
from jax.experimental import pallas as pl
from jax.experimental.pallas import tpu as pltpu


def _round_up(x, m):
    return (x + m - 1) // m * m


def _pick_tile(n128, want):
    """Largest multiple of 128 <= want that divides n128 (so tiles never force
    padding beyond the 128-rounding of N and lcm(tm, tk) divides n128)."""
    want = max(128, min(_round_up(want, 128), n128))
    q = n128 // 128
    for d in range(want // 128, 0, -1):
        if q % d == 0:
            return d * 128
    return 128


def _vmem_cap_bytes():
    try:
        return int(pltpu.get_tpu_info().vmem_capacity_bytes)
    except Exception:
        return 64 << 20            # conservative: v7x per-core VMEM


def _vmem_limit(est_bytes, cap_bytes):
    return int(min(max(2 * est_bytes, 32 << 20), cap_bytes - (8 << 20)))


def _gcn_prep_kernel(adj_ref, x_ref, xs_ref, r_ref, acc_ref):
    """Streamed rowsum of adj over K.  At the last K tile compute
    r = rsqrt(rowsum + 1) (the +1 is the A+I self loop, zero guarded like
    torch) and emit r (f32) plus the column-scaled features xs = r * [x | 1]
    in the MXU operand dtype."""
    k = pl.program_id(1)

    @pl.when(k == 0)
    def _init():
        acc_ref[...] = jnp.zeros_like(acc_ref)

    # f32 accumulation without materializing an f32 copy of the tile.
    acc_ref[...] += jnp.sum(adj_ref[...], axis=1, keepdims=True,
                            dtype=jnp.float32)

    @pl.when(k == pl.num_programs(1) - 1)
    def _finalize():
        deg = acc_ref[...] + 1.0                            # rowsum(A + I)
        r = jnp.where(deg == 0.0, 0.0, lax.rsqrt(deg))      # inf -> 0 (torch)
        r_ref[...] = r
        xs_ref[...] = (r * x_ref[...]).astype(xs_ref.dtype)


def _gcn_main_kernel(adj_ref, xs_ref, x_ref, r_ref, w_ref, b_ref, o_ref,
                     acc_ref, *, r_col, tk, precision, resident):
    """acc += adj_tile @ xs_tile over K (MXU, f32 accumulate).  Column `r_col`
    of xs holds r, so acc[:, r_col] == (A r).  Finalize:
        agg = r_i * (acc + r_i * x_i)          # == rows of A~ @ [x | 1]
        out = agg @ W^T + r_i*(acc[:,r_col]+r_i) ⊗ b   # rank-1 bias term
    """
    k = pl.program_id(1)

    @pl.when(k == 0)
    def _init():
        acc_ref[...] = jnp.zeros_like(acc_ref)

    if resident:     # xs fully resident in VMEM; slice the K chunk in-kernel.
        xs_k = xs_ref[pl.ds(pl.multiple_of(k * tk, 128), tk), :]
    else:            # streamed (tk, F) block per K step.
        xs_k = xs_ref[...]
    acc_ref[...] += jnp.dot(adj_ref[...], xs_k, precision=precision,
                            preferred_element_type=jnp.float32)

    @pl.when(k == pl.num_programs(1) - 1)
    def _finalize():
        acc = acc_ref[...]                                  # (TM, F_in_p) f32
        r_i = r_ref[...]                                    # (TM, 1)      f32
        x_i = x_ref[...]                                    # (TM, F_in_p) f32
        agg = r_i * (acc + r_i * x_i)                       # A~ @ [x | 1]
        out = jnp.dot(agg.astype(w_ref.dtype), w_ref[...], precision=precision,
                      preferred_element_type=jnp.float32)
        row_sum = r_i * (acc[:, r_col:r_col + 1] + r_i)     # rowsum(A~)
        o_ref[...] = (out + row_sum * b_ref[...]).astype(o_ref.dtype)


def gcn_layer_forward(x, adj, weight, bias, *, tile_m=512, tile_k=2048,
                      mxu_dtype=jnp.bfloat16, resident_xs=None):
    """x: (N, F_in) f32, adj: (N, N), weight: (F_out, F_in) torch layout,
    bias: (F_out,).  Returns (N, F_out) f32."""
    n, f_in = x.shape
    f_out, f_in_w = weight.shape
    assert f_in_w == f_in and adj.shape[-1] == n and bias.shape == (f_out,)

    eb = np.dtype(mxu_dtype).itemsize
    f32 = jnp.float32

    # Lane-dense padded feature dims; +1 spare lane in F_in stashes the ones
    # column that makes one streamed matmul yield both A(r*x) and A r.
    f_in_p = _round_up(f_in + 1, 128)
    f_out_p = _round_up(f_out, 128)
    r_col = f_in

    # Tiles divide the 128-padded node count.  Force >=2 row tiles when
    # possible so the "parallel" row axis can shard across v7x's 2 TCs.
    n_p = _round_up(n, 128)
    tm_want = tile_m if n_p < 256 else min(tile_m, n_p // 2)
    tm = _pick_tile(n_p, tm_want)
    tk = _pick_tile(n_p, tile_k)                                 # pass 2
    tk1 = _pick_tile(n_p, max(tile_k, (4 << 20) // (tm * eb)))   # pass 1 wider
    grid1 = (n_p // tm, n_p // tk1)
    grid2 = (n_p // tm, n_p // tk)

    # Keep xs resident in VMEM for pass 2 when small; otherwise stream per K.
    xs_bytes = n_p * f_in_p * eb
    if resident_xs is None:
        resident_xs = xs_bytes <= (8 << 20)

    # Host-side padding (zeros contribute nothing; padded rows sliced off).
    # Skip the O(N^2) adjacency rematerialization when it is already usable.
    if adj.shape == (n_p, n_p) and adj.dtype == mxu_dtype:
        adj_p = adj
    else:
        adj_p = jnp.zeros((n_p, n_p), mxu_dtype).at[:n, :n].set(
            adj.astype(mxu_dtype))
    x_p = jnp.zeros((n_p, f_in_p), f32).at[:n, :f_in].set(x.astype(f32))
    x_p = x_p.at[:n, r_col].set(1.0)                        # stashed ones col
    w_p = jnp.zeros((f_in_p, f_out_p), mxu_dtype).at[:f_in, :f_out].set(
        weight.T.astype(mxu_dtype))
    b_p = jnp.zeros((1, f_out_p), f32).at[0, :f_out].set(bias.astype(f32))

    cap = _vmem_cap_bytes()
    precision = (lax.Precision.HIGHEST if mxu_dtype == jnp.float32
                 else lax.Precision.DEFAULT)

    # ---- Pass 1: degrees -> r (f32) and xs = r * [x | 1] --------------------
    est1 = (2 * tm * tk1 * eb + 2 * tm * f_in_p * 4 + 2 * tm * f_in_p * eb
            + 4 * tm * 512)
    xs, r = pl.pallas_call(
        _gcn_prep_kernel,
        out_shape=(jax.ShapeDtypeStruct((n_p, f_in_p), mxu_dtype),
                   jax.ShapeDtypeStruct((n_p, 1), jnp.float32)),
        grid_spec=pltpu.PrefetchScalarGridSpec(
            num_scalar_prefetch=0,
            grid=grid1,
            in_specs=[
                pl.BlockSpec((tm, tk1), lambda i, k: (i, k)),       # adj
                pl.BlockSpec((tm, f_in_p), lambda i, k: (i, 0)),    # x
            ],
            out_specs=[
                pl.BlockSpec((tm, f_in_p), lambda i, k: (i, 0)),    # xs
                pl.BlockSpec((tm, 1), lambda i, k: (i, 0)),         # r
            ],
            scratch_shapes=[pltpu.VMEM((tm, 1), jnp.float32)],
        ),
        compiler_params=pltpu.CompilerParams(
            dimension_semantics=("parallel", "arbitrary"),
            vmem_limit_bytes=_vmem_limit(est1, cap),
        ),
    )(adj_p, x_p)

    # ---- Pass 2: acc += adj @ xs over K; finalize transform + rank-1 bias ---
    if resident_xs:
        xs_spec = pl.BlockSpec((n_p, f_in_p), lambda i, k: (0, 0))  # resident
        xs_vmem = 2 * xs_bytes
    else:
        xs_spec = pl.BlockSpec((tk, f_in_p), lambda i, k: (k, 0))   # streamed
        xs_vmem = 2 * tk * f_in_p * eb
    est2 = (2 * tm * tk * eb + xs_vmem + 2 * tm * f_in_p * 4
            + 2 * f_in_p * f_out_p * eb + 2 * tm * f_out_p * 4
            + tm * f_in_p * 4 + 6 * tm * 512)
    out_p = pl.pallas_call(
        functools.partial(_gcn_main_kernel, r_col=r_col, tk=tk,
                          precision=precision, resident=resident_xs),
        out_shape=jax.ShapeDtypeStruct((n_p, f_out_p), jnp.float32),
        grid_spec=pltpu.PrefetchScalarGridSpec(
            num_scalar_prefetch=0,
            grid=grid2,
            in_specs=[
                pl.BlockSpec((tm, tk), lambda i, k: (i, k)),           # adj
                xs_spec,                                               # xs
                pl.BlockSpec((tm, f_in_p), lambda i, k: (i, 0)),       # x self
                pl.BlockSpec((tm, 1), lambda i, k: (i, 0)),            # r
                pl.BlockSpec((f_in_p, f_out_p), lambda i, k: (0, 0)),  # W^T
                pl.BlockSpec((1, f_out_p), lambda i, k: (0, 0)),       # bias
            ],
            out_specs=pl.BlockSpec((tm, f_out_p), lambda i, k: (i, 0)),
            scratch_shapes=[pltpu.VMEM((tm, f_in_p), jnp.float32)],
        ),
        compiler_params=pltpu.CompilerParams(
            dimension_semantics=("parallel", "arbitrary"),
            vmem_limit_bytes=_vmem_limit(est2, cap),
        ),
    )(adj_p, xs, x_p, r, w_p, b_p)

    return out_p[:n, :f_out]


def _reference_gcn(x, adj, weight, bias):
    """Pure-JAX transliteration of the PyTorch forward."""
    h = x @ weight.T + bias
    n = x.shape[0]
    a = adj + jnp.eye(n, dtype=jnp.float32)
    rowsum = a.sum(1)
    r = rowsum ** -0.5
    r = jnp.where(jnp.isinf(r), 0.0, r)
    a_norm = (jnp.diag(r) @ a) @ jnp.diag(r)
    return a_norm @ h


if __name__ == "__main__":
    keys = jax.random.split(jax.random.PRNGKey(0), 12)

    def make_problem(kx, kadj, kw, kb, n, f_in, f_out):
        x = jax.random.normal(kx, (n, f_in), jnp.float32)
        adj = jax.random.uniform(kadj, (n, n), jnp.float32)   # non-neg weights
        bound = 1.0 / (f_in ** 0.5)                           # nn.Linear init
        weight = jax.random.uniform(kw, (f_out, f_in), jnp.float32, -bound, bound)
        bias = jax.random.uniform(kb, (f_out,), jnp.float32, -bound, bound)
        return x, adj, weight, bias

    # Case 1: module-sized shapes (N=8, 16 -> 32 features), f32 MXU operands,
    # single-tile grid -> tight numerical check of the fused algebra.
    x, adj, weight, bias = make_problem(*keys[0:4], n=8, f_in=16, f_out=32)
    out = jax.block_until_ready(
        gcn_layer_forward(x, adj, weight, bias, mxu_dtype=jnp.float32))
    ref = _reference_gcn(x, adj, weight, bias)
    assert out.shape == ref.shape
    assert jnp.allclose(out, ref, rtol=1e-4, atol=1e-4), "f32 mismatch vs ref"

    # Case 2: multi-tile (2 x 4) grid, bf16 MXU operands, resident-xs fast
    # path; non-128 feature dims exercise the lane padding.
    x, adj, weight, bias = make_problem(*keys[4:8], n=512, f_in=96, f_out=160)
    out = jax.block_until_ready(
        gcn_layer_forward(x, adj, weight, bias, tile_m=256, tile_k=128,
                          mxu_dtype=jnp.bfloat16))
    ref = _reference_gcn(x, adj, weight, bias)
    err = float(jnp.max(jnp.abs(out - ref)))
    tol = float(2e-2 * jnp.max(jnp.abs(ref)) + 2e-2)
    assert err <= tol, f"bf16 resident mismatch: max err {err} > tol {tol}"

    # Case 3: streamed-xs fallback, N=600 (not 128-aligned -> host padding),
    # multi-K (5 x 5) grid.
    x, adj, weight, bias = make_problem(*keys[8:12], n=600, f_in=48, f_out=80)
    out = jax.block_until_ready(
        gcn_layer_forward(x, adj, weight, bias, tile_m=128, tile_k=128,
                          mxu_dtype=jnp.bfloat16, resident_xs=False))
    ref = _reference_gcn(x, adj, weight, bias)
    err = float(jnp.max(jnp.abs(out - ref)))
    tol = float(2e-2 * jnp.max(jnp.abs(ref)) + 2e-2)
    assert err <= tol, f"bf16 streamed mismatch: max err {err} > tol {tol}"

    print("KERNEL_OK")
</pallas_src>

<mosaic_0001>
module attributes {stable_mosaic.version = 11 : i64} {
  func.func @_gcn_prep_kernel(%arg0: i32, %arg1: i32, %arg2: memref<128x128xf32, #tpu.memory_space<vmem>>, %arg3: memref<128x128xf32, #tpu.memory_space<vmem>>, %arg4: memref<128x128xf32, #tpu.memory_space<vmem>>, %arg5: memref<128x1xf32, #tpu.memory_space<vmem>>, %arg6: memref<128x1xf32, #tpu.memory_space<vmem>>) attributes {dimension_semantics = [#tpu.dimension_semantics<parallel>, #tpu.dimension_semantics<arbitrary>], iteration_bounds = array<i64: 1, 1>, scalar_prefetch = 0 : i64, scratch_operands = 1 : i64, tpu.core_type = #tpu.core_type<tc>, window_params = [{transform_indices = @transform_0, window_bounds = array<i64: 128, 128>}, {transform_indices = @transform_1, window_bounds = array<i64: 128, 128>}, {transform_indices = @transform_2, window_bounds = array<i64: 128, 128>}, {transform_indices = @transform_3, window_bounds = array<i64: 128, 1>}]} {
    %c0_i32 = arith.constant 0 : i32
    %0 = arith.cmpi eq, %arg1, %c0_i32 : i32
    %1 = arith.extui %0 : i1 to i32
    %c0_i32_0 = arith.constant 0 : i32
    %2 = arith.cmpi ne, %1, %c0_i32_0 : i32
    scf.if %2 {
      %cst_8 = arith.constant 0.000000e+00 : f32
      %12 = vector.broadcast %cst_8 : f32 to vector<128x1xf32>
      %c0_9 = arith.constant 0 : index
      %c0_10 = arith.constant 0 : index
      %13 = vector.load %arg6[%c0_9, %c0_10] : memref<128x1xf32, #tpu.memory_space<vmem>>, vector<128x1xf32>
      tpu.vector_store %arg6[%c0_9, %c0_10], %12 {strides = array<i32>} : memref<128x1xf32, #tpu.memory_space<vmem>>, vector<128x1xf32>,
    } else {
    }
    %c0 = arith.constant 0 : index
    %c0_1 = arith.constant 0 : index
    %3 = vector.load %arg6[%c0, %c0_1] : memref<128x1xf32, #tpu.memory_space<vmem>>, vector<128x1xf32>
    %c0_2 = arith.constant 0 : index
    %c0_3 = arith.constant 0 : index
    %4 = vector.load %arg2[%c0_2, %c0_3] : memref<128x128xf32, #tpu.memory_space<vmem>>, vector<128x128xf32>
    %cst = arith.constant dense<0.000000e+00> : vector<128xf32>
    %5 = vector.multi_reduction <add>, %4, %cst [1] : vector<128x128xf32> to vector<128xf32>
    %6 = vector.shape_cast %5 : vector<128xf32> to vector<128x1xf32>
    %7 = arith.addf %3, %6 : vector<128x1xf32>
    %c0_4 = arith.constant 0 : index
    %c0_5 = arith.constant 0 : index
    %8 = vector.load %arg6[%c0_4, %c0_5] : memref<128x1xf32, #tpu.memory_space<vmem>>, vector<128x1xf32>
    tpu.vector_store %arg6[%c0_4, %c0_5], %7 {strides = array<i32>} : memref<128x1xf32, #tpu.memory_space<vmem>>, vector<128x1xf32>,
    %c0_i32_6 = arith.constant 0 : i32
    %9 = arith.cmpi eq, %arg1, %c0_i32_6 : i32
    %10 = arith.extui %9 : i1 to i32
    %c0_i32_7 = arith.constant 0 : i32
    %11 = arith.cmpi ne, %10, %c0_i32_7 : i32
    scf.if %11 {
      %c0_8 = arith.constant 0 : index
      %c0_9 = arith.constant 0 : index
      %12 = vector.load %arg6[%c0_8, %c0_9] : memref<128x1xf32, #tpu.memory_space<vmem>>, vector<128x1xf32>
      %cst_10 = arith.constant 1.000000e+00 : f32
      %13 = vector.broadcast %cst_10 : f32 to vector<128x1xf32>
      %14 = arith.addf %12, %13 : vector<128x1xf32>
      %cst_11 = arith.constant 0.000000e+00 : f32
      %15 = vector.broadcast %cst_11 : f32 to vector<128x1xf32>
      %16 = arith.cmpf oeq, %14, %15 : vector<128x1xf32>
      %17 = math.rsqrt %14 : vector<128x1xf32>
      %cst_12 = arith.constant 0.000000e+00 : f32
      %18 = vector.broadcast %cst_12 : f32 to vector<128x1xf32>
      %19 = arith.select %16, %18, %17 : vector<128x1xi1>, vector<128x1xf32>
      %c0_13 = arith.constant 0 : index
      %c0_14 = arith.constant 0 : index
      %20 = vector.load %arg5[%c0_13, %c0_14] : memref<128x1xf32, #tpu.memory_space<vmem>>, vector<128x1xf32>
      tpu.vector_store %arg5[%c0_13, %c0_14], %19 {strides = array<i32>} : memref<128x1xf32, #tpu.memory_space<vmem>>, vector<128x1xf32>,
      %c0_15 = arith.constant 0 : index
      %c0_16 = arith.constant 0 : index
      %21 = vector.load %arg3[%c0_15, %c0_16] : memref<128x128xf32, #tpu.memory_space<vmem>>, vector<128x128xf32>
      %22 = vector.broadcast %19 : vector<128x1xf32> to vector<128x128xf32>
      %23 = arith.mulf %22, %21 : vector<128x128xf32>
      %c0_17 = arith.constant 0 : index
      %c0_18 = arith.constant 0 : index
      %24 = vector.load %arg4[%c0_17, %c0_18] : memref<128x128xf32, #tpu.memory_space<vmem>>, vector<128x128xf32>
      tpu.vector_store %arg4[%c0_17, %c0_18], %23 {strides = array<i32>} : memref<128x128xf32, #tpu.memory_space<vmem>>, vector<128x128xf32>,
    } else {
    }
    return
  }
  func.func @transform_0(%arg0: i32, %arg1: i32) -> (i32, i32) {
    %c0_i32 = arith.constant 0 : i32
    return %arg0, %arg1 : i32, i32
  }
  func.func @transform_1(%arg0: i32, %arg1: i32) -> (i32, i32) {
    %c0_i32 = arith.constant 0 : i32
    %c0_i32_0 = arith.constant 0 : i32
    return %arg0, %c0_i32 : i32, i32
  }
  func.func @transform_2(%arg0: i32, %arg1: i32) -> (i32, i32) {
    %c0_i32 = arith.constant 0 : i32
    %c0_i32_0 = arith.constant 0 : i32
    return %arg0, %c0_i32 : i32, i32
  }
  func.func @transform_3(%arg0: i32, %arg1: i32) -> (i32, i32) {
    %c0_i32 = arith.constant 0 : i32
    %c0_i32_0 = arith.constant 0 : i32
    return %arg0, %c0_i32 : i32, i32
  }
}

</mosaic_0001>

<bundles_post_ra>
// kernel: tpu_custom_call.1
= control target key start
LH: loop header
LB: loop body
LE: loop exit
PB: predicated region body
PF: predicated region fallthrough
CT: control target
= control target key end

     0   :  { %9 = vsyncpa [#allocation4], 0  ;;  %s710_s0 = inlined_call_operand.hbm [shape: f32[128,128], index: 0, kind: input, shape index: {}]   ;;  %s711_s1 = inlined_call_operand.hbm [shape: f32[128,128], index: 1, kind: input, shape index: {}]   ;;  %s712_s2 = inlined_call_operand.hbm [shape: f32[128,128], index: 2, kind: output, shape index: {0}]   ;;  %s713_s3 = inlined_call_operand.vmem [shape: f32[128,1], index: 3, kind: output, shape index: {1}]  }
   0x1   :  { %10 = vsyncpa [#allocation7], 0 }
   0x2   :  { %11 = vsyncpa [#allocation5], 0  ;;  %s522_s12 = smov [#allocation3]   ;;  %s450_s16 = scalar_lea.hbm %s710_s0, 2048 }
   0x3   :  { %s17_s13 = sshll.u32 %s522_s12, 4  ;;  %p451_p0 = scmp.ne.s32.totalorder %s710_s0, %s450_s16  ;;  %s18_s13 = int_to_ptr.vmem [resolvable:$true] %s17_s13 }
   0x4   :  { %p454_p1 = scmp.lt.u32.totalorder %s450_s16, %s710_s0 }
   0x6   :  { %p456_p2 = pnand %p454_p1, %p451_p0 }
   0x8   :  { %459 = shalt.err (!%p456_p2)
}
   0x9   :  { %s460_s21 = scalar_lea.vmem %s18_s13, 2048  ;;  %p465_p4 = scmp.lt.s32.totalorder %s18_s13, %s18_s13 }
   0xa   :  { %p461_p3 = scmp.ne.s32.totalorder %s18_s13, %s460_s21  ;;  %p466_p5 = scmp.lt.s32.totalorder %s460_s21, %s460_s21 }
   0xc   :  { %p467_p6 = por %p466_p5, %p465_p4 }
   0xe   :  { %p468_p7 = pnand %p467_p6, %p461_p3 }
  0x10   :  { %471 = shalt.err (!%p468_p7)
}
  0x11   :  { %s523_s22 = smov 128   ;;  %s524_s23 = smov 8  }
  0x12   :  { %23 = dma.hbm_to_vmem [thread:$0]  %s710_s0, 2048, %s18_s13, [#allocation4], %s523_s22, %s523_s22, %s524_s23  }
  0x13   :  { %s525_s26 = smov [#allocation6]   ;;  %s472_s30 = scalar_lea.hbm %s711_s1, 2048 }
  0x14   :  { %s29_s27 = sshll.u32 %s525_s26, 4  ;;  %p473_p8 = scmp.ne.s32.totalorder %s711_s1, %s472_s30  ;;  %s30_s27 = int_to_ptr.vmem [resolvable:$true] %s29_s27 }
  0x15   :  { %p476_p9 = scmp.lt.u32.totalorder %s472_s30, %s711_s1 }
  0x17   :  { %p478_p10 = pnand %p476_p9, %p473_p8 }
  0x19   :  { %481 = shalt.err (!%p478_p10)
}
  0x1a   :  { %s482_s8 = scalar_lea.vmem %s30_s27, 2048  ;;  %p487_p12 = scmp.lt.s32.totalorder %s30_s27, %s30_s27 }
  0x1b   :  { %p483_p11 = scmp.ne.s32.totalorder %s30_s27, %s482_s8  ;;  %p488_p13 = scmp.lt.s32.totalorder %s482_s8, %s482_s8 }
  0x1d   :  { %p489_p0 = por %p488_p13, %p487_p12 }
  0x1f   :  { %p490_p1 = pnand %p489_p0, %p483_p11 }
  0x21   :  { %493 = shalt.err (!%p490_p1)
}
  0x22   :  { %35 = dma.hbm_to_vmem [thread:$0]  %s711_s1, 2048, %s30_s27, [#allocation7], %s523_s22, %s523_s22, %s524_s23  }
  0x23   :  { %516 = dma.done.wait [#allocation4], 2048  }
  0x24   :  { %517 = vsyncadd [#allocation4], 4294965248 }
  0x25   :  { %518 = dma.done.wait [#allocation7], 2048  }
  0x26   :  { %519 = vsyncadd [#allocation7], 4294965248  ;;  %vm46_vm0 = vcmask 7168   ;;  %v526_v0 = vmov 0.0   ;;  %v81_v1 = vld [vmem:[#allocation3 + $0x10] sm:$0xff]  ;;  %v79_v2 = vld [vmem:[#allocation3] sm:$0xff] }
  0x27   :  { %49 = vst.msk [vmem:[#allocation2 + $0x10] sm:$0xff] %vm46_vm0, %v526_v0  ;;  %47 = vst.msk [vmem:[#allocation2] sm:$0xff] %vm46_vm0, %v526_v0  ;;  %99 = vadd.xlane.f32.xlu1 %v81_v1  ;;  %95 = vadd.xlane.f32.xlu0 %v79_v2  ;;  %v82_v3 = vld [vmem:[#allocation3 + $0x18] sm:$0xff]  ;;  %v80_v4 = vld [vmem:[#allocation3 + $0x8] sm:$0xff]  ;;  %v527_v17 = vmov 0  }
  0x28   :  { %48 = vst.msk [vmem:[#allocation2 + $0x8] sm:$0xff] %vm46_vm0, %v526_v0  ;;  %50 = vst.msk [vmem:[#allocation2 + $0x18] sm:$0xff] %vm46_vm0, %v526_v0  ;;  %v84_v5 = vld [vmem:[#allocation3 + $0x28] sm:$0xff]  ;;  %v83_v6 = vld [vmem:[#allocation3 + $0x20] sm:$0xff]  ;;  %416 = vset.pattern.permute.xlu0 %v527_v17  ;;  %417 = vset.pattern.permute.xlu1 %v527_v17 }
  0x29   :  { %51 = vst.msk [vmem:[#allocation2 + $0x20] sm:$0xff] %vm46_vm0, %v526_v0  ;;  %52 = vst.msk [vmem:[#allocation2 + $0x28] sm:$0xff] %vm46_vm0, %v526_v0  ;;  %v86_v7 = vld [vmem:[#allocation3 + $0x38] sm:$0xff]  ;;  %v85_v8 = vld [vmem:[#allocation3 + $0x30] sm:$0xff] }
  0x2a   :  { %53 = vst.msk [vmem:[#allocation2 + $0x30] sm:$0xff] %vm46_vm0, %v526_v0  ;;  %54 = vst.msk [vmem:[#allocation2 + $0x38] sm:$0xff] %vm46_vm0, %v526_v0  ;;  %v88_v9 = vld [vmem:[#allocation3 + $0x48] sm:$0xff]  ;;  %v87_v10 = vld [vmem:[#allocation3 + $0x40] sm:$0xff] }
  0x2b   :  { %55 = vst.msk [vmem:[#allocation2 + $0x40] sm:$0xff] %vm46_vm0, %v526_v0  ;;  %56 = vst.msk [vmem:[#allocation2 + $0x48] sm:$0xff] %vm46_vm0, %v526_v0  ;;  %101 = vadd.xlane.f32.xlu1 %v82_v3  ;;  %97 = vadd.xlane.f32.xlu0 %v80_v4  ;;  %v90_v11 = vld [vmem:[#allocation3 + $0x58] sm:$0xff]  ;;  %v89_v12 = vld [vmem:[#allocation3 + $0x50] sm:$0xff] }
  0x2c   :  { %57 = vst.msk [vmem:[#allocation2 + $0x50] sm:$0xff] %vm46_vm0, %v526_v0  ;;  %58 = vst.msk [vmem:[#allocation2 + $0x58] sm:$0xff] %vm46_vm0, %v526_v0  ;;  %v92_v13 = vld [vmem:[#allocation3 + $0x68] sm:$0xff]  ;;  %v91_v14 = vld [vmem:[#allocation3 + $0x60] sm:$0xff] }
  0x2d   :  { %59 = vst.msk [vmem:[#allocation2 + $0x60] sm:$0xff] %vm46_vm0, %v526_v0  ;;  %60 = vst.msk [vmem:[#allocation2 + $0x68] sm:$0xff] %vm46_vm0, %v526_v0  ;;  %v94_v15 = vld [vmem:[#allocation3 + $0x78] sm:$0xff]  ;;  %v93_v16 = vld [vmem:[#allocation3 + $0x70] sm:$0xff] }
  0x2e   :  { %61 = vst.msk [vmem:[#allocation2 + $0x70] sm:$0xff] %vm46_vm0, %v526_v0  ;;  %62 = vst.msk [vmem:[#allocation2 + $0x78] sm:$0xff] %vm46_vm0, %v526_v0  ;;  %v65_v18 = vld [vmem:[#allocation2 + $0x10] sm:$0xff]  ;;  %v63_v19 = vld [vmem:[#allocation2] sm:$0xff] }
  0x2f   :  { %105 = vadd.xlane.f32.xlu1 %v84_v5  ;;  %103 = vadd.xlane.f32.xlu0 %v83_v6  ;;  %v66_v24 = vld [vmem:[#allocation2 + $0x18] sm:$0xff]  ;;  %v64_v25 = vld [vmem:[#allocation2 + $0x8] sm:$0xff] }
  0x30   :  { %v68_v30 = vld [vmem:[#allocation2 + $0x28] sm:$0xff]  ;;  %v67_v31 = vld [vmem:[#allocation2 + $0x20] sm:$0xff] }
  0x31   :  { %v70_v36 = vld [vmem:[#allocation2 + $0x38] sm:$0xff]  ;;  %v69_v37 = vld [vmem:[#allocation2 + $0x30] sm:$0xff] }
  0x32   :  { %v72_v46 = vld [vmem:[#allocation2 + $0x48] sm:$0xff]  ;;  %v71_v47 = vld [vmem:[#allocation2 + $0x40] sm:$0xff] }
  0x33   :  { %109 = vadd.xlane.f32.xlu1 %v86_v7  ;;  %107 = vadd.xlane.f32.xlu0 %v85_v8  ;;  %v74_v55 = vld [vmem:[#allocation2 + $0x58] sm:$0xff]  ;;  %v73_v57 = vld [vmem:[#allocation2 + $0x50] sm:$0xff] }
  0x34   :  { %v76_v1 = vld [vmem:[#allocation2 + $0x68] sm:$0xff]  ;;  %v75_v3 = vld [vmem:[#allocation2 + $0x60] sm:$0xff] }
  0x35   :  { %v77_v17 = vld [vmem:[#allocation2 + $0x70] sm:$0xff] }
  0x37   :  { %113 = vadd.xlane.f32.xlu1 %v88_v9  ;;  %111 = vadd.xlane.f32.xlu0 %v87_v10 }
  0x3b   :  { %117 = vadd.xlane.f32.xlu1 %v90_v11  ;;  %115 = vadd.xlane.f32.xlu0 %v89_v12 }
  0x3f   :  { %121 = vadd.xlane.f32.xlu1 %v92_v13  ;;  %119 = vadd.xlane.f32.xlu0 %v91_v14  ;;  %v78_v14 = vld [vmem:[#allocation2 + $0x78] sm:$0xff] }
  0x43   :  { %125 = vadd.xlane.f32.xlu1 %v94_v15  ;;  %123 = vadd.xlane.f32.xlu0 %v93_v16 }
  0xb4   :  { %v100_v20 = vpop.xlane.xlu1 %99  ;;  %v96_v21 = vpop.xlane.xlu0 %95 }
  0xb5   :  { %v129_v22 = vadd.f32 %v100_v20, %v65_v18  ;;  %v127_v23 = vadd.f32 %v96_v21, %v63_v19 }
  0xb7   :  { %146 = vst.msk [vmem:[#allocation2 + $0x10] sm:$0xff] %vm46_vm0, %v129_v22  ;;  %144 = vst.msk [vmem:[#allocation2] sm:$0xff] %vm46_vm0, %v127_v23 }
  0xb8   :  { %v102_v26 = vpop.xlane.xlu1 %101  ;;  %v98_v27 = vpop.xlane.xlu0 %97 }
  0xb9   :  { %v130_v28 = vadd.f32 %v102_v26, %v66_v24  ;;  %v128_v29 = vadd.f32 %v98_v27, %v64_v25 }
  0xbb   :  { %147 = vst.msk [vmem:[#allocation2 + $0x18] sm:$0xff] %vm46_vm0, %v130_v28  ;;  %145 = vst.msk [vmem:[#allocation2 + $0x8] sm:$0xff] %vm46_vm0, %v128_v29 }
  0xbc   :  { %v106_v32 = vpop.xlane.xlu1 %105  ;;  %v104_v33 = vpop.xlane.xlu0 %103 }
  0xbd   :  { %v132_v34 = vadd.f32 %v106_v32, %v68_v30  ;;  %v131_v35 = vadd.f32 %v104_v33, %v67_v31 }
  0xbe   :  { %v163_v38 = vld [vmem:[#allocation2] sm:$0xff]  ;;  %v165_v39 = vld [vmem:[#allocation2 + $0x10] sm:$0xff] }
  0xbf   :  { %149 = vst.msk [vmem:[#allocation2 + $0x28] sm:$0xff] %vm46_vm0, %v132_v34  ;;  %148 = vst.msk [vmem:[#allocation2 + $0x20] sm:$0xff] %vm46_vm0, %v131_v35  ;;  %v179_v40 = vadd.f32 1.0, %v163_v38  ;;  %v181_v41 = vadd.f32 1.0, %v165_v39 }
  0xc0   :  { %v110_v42 = vpop.xlane.xlu1 %109  ;;  %v108_v43 = vpop.xlane.xlu0 %107 }
  0xc1   :  { %v134_v44 = vadd.f32 %v110_v42, %v70_v36  ;;  %v133_v45 = vadd.f32 %v108_v43, %v69_v37  ;;  %418 = vrsqrt.f32 %v179_v40  ;;  %vm195_vm1 = vcmp.eq.f32.partialorder %v179_v40, 0.0 }
  0xc2   :  { %v164_v48 = vld [vmem:[#allocation2 + $0x8] sm:$0xff]  ;;  %420 = vrsqrt.f32 %v181_v41  ;;  %v166_v49 = vld [vmem:[#allocation2 + $0x18] sm:$0xff]  ;;  %vm197_vm2 = vcmp.eq.f32.partialorder %v181_v41, 0.0 }
  0xc3   :  { %151 = vst.msk [vmem:[#allocation2 + $0x38] sm:$0xff] %vm46_vm0, %v134_v44  ;;  %150 = vst.msk [vmem:[#allocation2 + $0x30] sm:$0xff] %vm46_vm0, %v133_v45  ;;  %v180_v50 = vadd.f32 1.0, %v164_v48  ;;  %v603_v51 = vadd.f32 1.0, %v166_v49 }
  0xc4   :  { %v114_v52 = vpop.xlane.xlu1 %113  ;;  %v112_v53 = vpop.xlane.xlu0 %111 }
  0xc5   :  { %v136_v54 = vadd.f32 %v114_v52, %v72_v46  ;;  %v135_v56 = vadd.f32 %v112_v53, %v71_v47  ;;  %422 = vrsqrt.f32 %v180_v50  ;;  %vm196_vm3 = vcmp.eq.f32.partialorder %v180_v50, 0.0 }
  0xc6   :  { %424 = vrsqrt.f32 %v603_v51  ;;  %v167_v58 = vld [vmem:[#allocation2 + $0x20] sm:$0xff]  ;;  %v168_v59 = vld [vmem:[#allocation2 + $0x28] sm:$0xff]  ;;  %vm198_vm4 = vcmp.eq.f32.partialorder %v603_v51, 0.0 }
  0xc7   :  { %153 = vst.msk [vmem:[#allocation2 + $0x48] sm:$0xff] %vm46_vm0, %v136_v54  ;;  %152 = vst.msk [vmem:[#allocation2 + $0x40] sm:$0xff] %vm46_vm0, %v135_v56  ;;  %v608_v60 = vadd.f32 1.0, %v167_v58  ;;  %v610_v61 = vadd.f32 1.0, %v168_v59 }
  0xc8   :  { %v118_v62 = vpop.xlane.xlu1 %117  ;;  %v116_v63 = vpop.xlane.xlu0 %115 }
  0xc9   :  { %v138_v0 = vadd.f32 %v118_v62, %v74_v55  ;;  %v137_v2 = vadd.f32 %v116_v63, %v73_v57  ;;  %426 = vrsqrt.f32 %v608_v60  ;;  %vm200_vm5 = vcmp.eq.f32.partialorder %v610_v61, 0.0 }
  0xca   :  { %428 = vrsqrt.f32 %v610_v61  ;;  %v169_v4 = vld [vmem:[#allocation2 + $0x30] sm:$0xff]  ;;  %v170_v5 = vld [vmem:[#allocation2 + $0x38] sm:$0xff]  ;;  %vm199_vm6 = vcmp.eq.f32.partialorder %v608_v60, 0.0 }
  0xcb   :  { %v419_v6 = vpop.eup %418  ;;  %155 = vst.msk [vmem:[#allocation2 + $0x58] sm:$0xff] %vm46_vm0, %v138_v0  ;;  %154 = vst.msk [vmem:[#allocation2 + $0x50] sm:$0xff] %vm46_vm0, %v137_v2  ;;  %v616_v7 = vadd.f32 1.0, %v169_v4  ;;  %v618_v8 = vadd.f32 1.0, %v170_v5  ;;  %v259_v2 = vld [vmem:[#allocation6] sm:$0xff]  ;;  %v260_v5 = vld [vmem:[#allocation6 + $0x8] sm:$0xff] }
  0xcc   :  { %v421_v9 = vpop.eup %420  ;;  %v122_v10 = vpop.xlane.xlu1 %121  ;;  %v227_v11 = vsel %vm195_vm1, 0.0, %v419_v6 }
  0xcd   :  { %v120_v12 = vpop.xlane.xlu0 %119  ;;  %v140_v13 = vadd.f32 %v122_v10, %v76_v1  ;;  %277 = vperm.xlu0 %416, %v227_v11   ;;  %243 = vst.msk [vmem:[%s713_s3] sm:$0xff] %vm46_vm0, %v227_v11  ;;  %v229_v16 = vsel %vm197_vm2, 0.0, %v421_v9  ;;  %430 = vrsqrt.f32 %v616_v7  ;;  %vm201_vm7 = vcmp.eq.f32.partialorder %v616_v7, 0.0  ;;  %v262_v11 = vld [vmem:[#allocation6 + $0x18] sm:$0xff] }
  0xce   :  { %v139_v15 = vadd.f32 %v120_v12, %v75_v3  ;;  %245 = vst.msk [vmem:[%s713_s3 + $0x10] sm:$0xff] %vm46_vm0, %v229_v16  ;;  %v172_v18 = vld [vmem:[#allocation2 + $0x48] sm:$0xff]  ;;  %v171_v19 = vld [vmem:[#allocation2 + $0x40] sm:$0xff]  ;;  %432 = vrsqrt.f32 %v618_v8  ;;  %vm202_vm8 = vcmp.eq.f32.partialorder %v618_v8, 0.0  ;;  %v261_v8 = vld [vmem:[#allocation6 + $0x10] sm:$0xff] }
  0xcf   :  { %v423_v20 = vpop.eup %422  ;;  %157 = vst.msk [vmem:[#allocation2 + $0x68] sm:$0xff] %vm46_vm0, %v140_v13  ;;  %v188_v21 = vadd.f32 1.0, %v172_v18  ;;  %v187_v22 = vadd.f32 1.0, %v171_v19 }
  0xd0   :  { %156 = vst.msk [vmem:[#allocation2 + $0x60] sm:$0xff] %vm46_vm0, %v139_v15  ;;  %v425_v23 = vpop.eup %424  ;;  %v126_v24 = vpop.xlane.xlu1 %125  ;;  %v228_v25 = vsel %vm196_vm3, 0.0, %v423_v20  ;;  %v268_v15 = vld [vmem:[#allocation6 + $0x48] sm:$0xff] }
  0xd1   :  { %v124_v26 = vpop.xlane.xlu0 %123  ;;  %v142_v27 = vadd.f32 %v126_v24, %v78_v14  ;;  %282 = vperm.xlu1 %417, %v228_v25   ;;  %244 = vst.msk [vmem:[%s713_s3 + $0x8] sm:$0xff] %vm46_vm0, %v228_v25  ;;  %v230_v29 = vsel %vm198_vm4, 0.0, %v425_v23  ;;  %434 = vrsqrt.f32 %v188_v21  ;;  %vm204_vm9 = vcmp.eq.f32.partialorder %v188_v21, 0.0  ;;  %v263_v14 = vld [vmem:[#allocation6 + $0x20] sm:$0xff]  ;;  %v264_v20 = vld [vmem:[#allocation6 + $0x28] sm:$0xff]  ;;  %v270_v21 = vld [vmem:[#allocation6 + $0x58] sm:$0xff] }
  0xd2   :  { %v141_v28 = vadd.f32 %v124_v26, %v77_v17  ;;  %246 = vst.msk [vmem:[%s713_s3 + $0x18] sm:$0xff] %vm46_vm0, %v230_v29  ;;  %v174_v30 = vld [vmem:[#allocation2 + $0x58] sm:$0xff]  ;;  %v173_v31 = vld [vmem:[#allocation2 + $0x50] sm:$0xff]  ;;  %436 = vrsqrt.f32 %v187_v22  ;;  %vm203_vm10 = vcmp.eq.f32.partialorder %v187_v22, 0.0 }
  0xd3   :  { %v427_v32 = vpop.eup %426  ;;  %159 = vst.msk [vmem:[#allocation2 + $0x78] sm:$0xff] %vm46_vm0, %v142_v27  ;;  %v190_v33 = vadd.f32 1.0, %v174_v30  ;;  %v189_v34 = vadd.f32 1.0, %v173_v31  ;;  %v265_v26 = vld [vmem:[#allocation6 + $0x30] sm:$0xff]  ;;  %v272_v27 = vld [vmem:[#allocation6 + $0x68] sm:$0xff] }
  0xd4   :  { %158 = vst.msk [vmem:[#allocation2 + $0x70] sm:$0xff] %vm46_vm0, %v141_v28  ;;  %v429_v35 = vpop.eup %428  ;;  %v231_v36 = vsel %vm199_vm6, 0.0, %v427_v32  ;;  %v266_v32 = vld [vmem:[#allocation6 + $0x38] sm:$0xff] }
  0xd5   :  { %287 = vperm.xlu1 %417, %v229_v16   ;;  %247 = vst.msk [vmem:[%s713_s3 + $0x20] sm:$0xff] %vm46_vm0, %v231_v36  ;;  %v232_v37 = vsel %vm200_vm5, 0.0, %v429_v35  ;;  %438 = vrsqrt.f32 %v190_v33  ;;  %vm206_vm11 = vcmp.eq.f32.partialorder %v190_v33, 0.0  ;;  %vm205_vm12 = vcmp.eq.f32.partialorder %v189_v34, 0.0  ;;  %v274_v33 = vld [vmem:[#allocation6 + $0x78] sm:$0xff] }
  0xd6   :  { %248 = vst.msk [vmem:[%s713_s3 + $0x28] sm:$0xff] %vm46_vm0, %v232_v37  ;;  %v176_v38 = vld [vmem:[#allocation2 + $0x68] sm:$0xff]  ;;  %440 = vrsqrt.f32 %v189_v34 }
  0xd7   :  { %v175_v39 = vld [vmem:[#allocation2 + $0x60] sm:$0xff]  ;;  %v192_v40 = vadd.f32 1.0, %v176_v38  ;;  %v431_v42 = vpop.eup %430 }
  0xd8   :  { %v191_v41 = vadd.f32 1.0, %v175_v39  ;;  %v433_v43 = vpop.eup %432  ;;  %v233_v44 = vsel %vm201_vm7, 0.0, %v431_v42  ;;  %v267_v38 = vld [vmem:[#allocation6 + $0x40] sm:$0xff] }
  0xd9   :  { %292 = vperm.xlu1 %417, %v230_v29   ;;  %442 = vrsqrt.f32 %v192_v40  ;;  %249 = vst.msk [vmem:[%s713_s3 + $0x30] sm:$0xff] %vm46_vm0, %v233_v44  ;;  %v234_v45 = vsel %vm202_vm8, 0.0, %v433_v43  ;;  %vm208_vm13 = vcmp.eq.f32.partialorder %v192_v40, 0.0 }
  0xda   :  { %v178_v46 = vld [vmem:[#allocation2 + $0x78] sm:$0xff]  ;;  %444 = vrsqrt.f32 %v191_v41  ;;  %250 = vst.msk [vmem:[%s713_s3 + $0x38] sm:$0xff] %vm46_vm0, %v234_v45  ;;  %vm207_vm14 = vcmp.eq.f32.partialorder %v191_v41, 0.0  ;;  %v269_v41 = vld [vmem:[#allocation6 + $0x50] sm:$0xff] }
  0xdb   :  { %v177_v47 = vld [vmem:[#allocation2 + $0x70] sm:$0xff]  ;;  %v194_v48 = vadd.f32 1.0, %v178_v46  ;;  %v435_v50 = vpop.eup %434 }
  0xdc   :  { %v193_v49 = vadd.f32 1.0, %v177_v47  ;;  %v437_v51 = vpop.eup %436  ;;  %v236_v52 = vsel %vm204_vm9, 0.0, %v435_v50  ;;  %v273_v47 = vld [vmem:[#allocation6 + $0x70] sm:$0xff] }
  0xdd   :  { %297 = vperm.xlu1 %417, %v231_v36   ;;  %446 = vrsqrt.f32 %v194_v48  ;;  %252 = vst.msk [vmem:[%s713_s3 + $0x48] sm:$0xff] %vm46_vm0, %v236_v52  ;;  %322 = vperm.xlu0 %416, %v236_v52   ;;  %v235_v53 = vsel %vm203_vm10, 0.0, %v437_v51  ;;  %vm210_vm15 = vcmp.eq.f32.partialorder %v194_v48, 0.0 }
  0xde   :  { %448 = vrsqrt.f32 %v193_v49  ;;  %251 = vst.msk [vmem:[%s713_s3 + $0x40] sm:$0xff] %vm46_vm0, %v235_v53  ;;  %vm209_vm1 = vcmp.eq.f32.partialorder %v193_v49, 0.0 }
  0xdf   :  { %v439_v54 = vpop.eup %438 }
  0xe0   :  { %v441_v55 = vpop.eup %440  ;;  %v238_v56 = vsel %vm206_vm11, 0.0, %v439_v54 }
  0xe1   :  { %302 = vperm.xlu1 %417, %v232_v37   ;;  %254 = vst.msk [vmem:[%s713_s3 + $0x58] sm:$0xff] %vm46_vm0, %v238_v56  ;;  %v237_v57 = vsel %vm205_vm12, 0.0, %v441_v55  ;;  %332 = vperm.xlu0 %416, %v238_v56  }
  0xe2   :  { %253 = vst.msk [vmem:[%s713_s3 + $0x50] sm:$0xff] %vm46_vm0, %v237_v57 }
  0xe3   :  { %v443_v58 = vpop.eup %442 }
  0xe4   :  { %v445_v59 = vpop.eup %444  ;;  %v240_v60 = vsel %vm208_vm13, 0.0, %v443_v58 }
  0xe5   :  { %307 = vperm.xlu1 %417, %v233_v44   ;;  %256 = vst.msk [vmem:[%s713_s3 + $0x68] sm:$0xff] %vm46_vm0, %v240_v60  ;;  %v239_v61 = vsel %vm207_vm14, 0.0, %v445_v59  ;;  %342 = vperm.xlu0 %416, %v240_v60   ;;  %v271_v44 = vld [vmem:[#allocation6 + $0x60] sm:$0xff] }
  0xe6   :  { %255 = vst.msk [vmem:[%s713_s3 + $0x60] sm:$0xff] %vm46_vm0, %v239_v61 }
  0xe7   :  { %v447_v62 = vpop.eup %446 }
  0xe8   :  { %v449_v63 = vpop.eup %448  ;;  %v242_v0 = vsel %vm210_vm15, 0.0, %v447_v62 }
  0xe9   :  { %312 = vperm.xlu1 %417, %v234_v45   ;;  %258 = vst.msk [vmem:[%s713_s3 + $0x78] sm:$0xff] %vm46_vm0, %v242_v0  ;;  %v241_v1 = vsel %vm209_vm1, 0.0, %v449_v63  ;;  %352 = vperm.xlu0 %416, %v242_v0  }
  0xea   :  { %257 = vst.msk [vmem:[%s713_s3 + $0x70] sm:$0xff] %vm46_vm0, %v241_v1  ;;  %s528_s3 = smov [#allocation8]  }
  0xeb   :  { %s392_s14 = sshll.u32 %s528_s3, 4  ;;  %s393_s14 = int_to_ptr.vmem [resolvable:$true] %s392_s14 }
  0xec   :  { %s494_s15 = scalar_lea.vmem %s393_s14, 2048  ;;  %p499_p3 = scmp.lt.s32.totalorder %s393_s14, %s393_s14 }
  0xed   :  { %317 = vperm.xlu1 %417, %v235_v53   ;;  %p495_p2 = scmp.ne.s32.totalorder %s393_s14, %s494_s15  ;;  %p500_p4 = scmp.lt.s32.totalorder %s494_s15, %s494_s15 }
  0xef   :  { %p501_p5 = por %p500_p4, %p499_p3 }
  0xf1   :  { %327 = vperm.xlu1 %417, %v237_v57   ;;  %p502_p6 = pnand %p501_p5, %p495_p2 }
  0xf5   :  { %337 = vperm.xlu1 %417, %v239_v61  }
  0xf9   :  { %347 = vperm.xlu1 %417, %v241_v1  }
 0x14c   :  { %v278_v3 = vpop.permute.xlu0 %277 }
 0x14d   :  { %v355_v4 = vmul.f32 %v278_v3, %v259_v2 }
 0x14f   :  { %371 = vst [vmem:[#allocation8] sm:$0xff] %v355_v4 }
 0x150   :  { %v283_v6 = vpop.permute.xlu1 %282 }
 0x151   :  { %v356_v7 = vmul.f32 %v283_v6, %v260_v5 }
 0x153   :  { %372 = vst [vmem:[#allocation8 + $0x8] sm:$0xff] %v356_v7 }
 0x154   :  { %v288_v9 = vpop.permute.xlu1 %287 }
 0x155   :  { %v357_v10 = vmul.f32 %v288_v9, %v261_v8 }
 0x157   :  { %373 = vst [vmem:[#allocation8 + $0x10] sm:$0xff] %v357_v10 }
 0x158   :  { %v293_v12 = vpop.permute.xlu1 %292 }
 0x159   :  { %v358_v13 = vmul.f32 %v293_v12, %v262_v11 }
 0x15b   :  { %374 = vst [vmem:[#allocation8 + $0x18] sm:$0xff] %v358_v13 }
 0x15c   :  { %v298_v16 = vpop.permute.xlu1 %297  ;;  %v323_v18 = vpop.permute.xlu0 %322 }
 0x15d   :  { %v359_v17 = vmul.f32 %v298_v16, %v263_v14  ;;  %v364_v19 = vmul.f32 %v323_v18, %v268_v15 }
 0x15f   :  { %375 = vst [vmem:[#allocation8 + $0x20] sm:$0xff] %v359_v17  ;;  %380 = vst [vmem:[#allocation8 + $0x48] sm:$0xff] %v364_v19 }
 0x160   :  { %v303_v22 = vpop.permute.xlu1 %302  ;;  %v333_v24 = vpop.permute.xlu0 %332 }
 0x161   :  { %v360_v23 = vmul.f32 %v303_v22, %v264_v20  ;;  %v366_v25 = vmul.f32 %v333_v24, %v270_v21 }
 0x163   :  { %376 = vst [vmem:[#allocation8 + $0x28] sm:$0xff] %v360_v23  ;;  %382 = vst [vmem:[#allocation8 + $0x58] sm:$0xff] %v366_v25 }
 0x164   :  { %v308_v28 = vpop.permute.xlu1 %307  ;;  %v343_v30 = vpop.permute.xlu0 %342 }
 0x165   :  { %v361_v29 = vmul.f32 %v308_v28, %v265_v26  ;;  %v368_v31 = vmul.f32 %v343_v30, %v272_v27 }
 0x167   :  { %377 = vst [vmem:[#allocation8 + $0x30] sm:$0xff] %v361_v29  ;;  %384 = vst [vmem:[#allocation8 + $0x68] sm:$0xff] %v368_v31 }
 0x168   :  { %v313_v34 = vpop.permute.xlu1 %312  ;;  %v353_v36 = vpop.permute.xlu0 %352 }
 0x169   :  { %v362_v35 = vmul.f32 %v313_v34, %v266_v32  ;;  %v370_v37 = vmul.f32 %v353_v36, %v274_v33 }
 0x16b   :  { %378 = vst [vmem:[#allocation8 + $0x38] sm:$0xff] %v362_v35  ;;  %386 = vst [vmem:[#allocation8 + $0x78] sm:$0xff] %v370_v37 }
 0x16c   :  { %v318_v39 = vpop.permute.xlu1 %317 }
 0x16d   :  { %v363_v40 = vmul.f32 %v318_v39, %v267_v38 }
 0x16f   :  { %379 = vst [vmem:[#allocation8 + $0x40] sm:$0xff] %v363_v40 }
 0x170   :  { %v328_v42 = vpop.permute.xlu1 %327 }
 0x171   :  { %v365_v43 = vmul.f32 %v328_v42, %v269_v41 }
 0x173   :  { %381 = vst [vmem:[#allocation8 + $0x50] sm:$0xff] %v365_v43 }
 0x174   :  { %v338_v45 = vpop.permute.xlu1 %337 }
 0x175   :  { %v367_v46 = vmul.f32 %v338_v45, %v271_v44 }
 0x177   :  { %383 = vst [vmem:[#allocation8 + $0x60] sm:$0xff] %v367_v46 }
 0x178   :  { %v348_v48 = vpop.permute.xlu1 %347 }
 0x179   :  { %v369_v49 = vmul.f32 %v348_v48, %v273_v47 }
 0x17b   :  { %385 = vst [vmem:[#allocation8 + $0x70] sm:$0xff] %v369_v49 }
 0x17c   :  { %505 = shalt.err (!%p502_p6)
}
 0x17d   :  { %s506_s18 = scalar_lea.hbm %s712_s2, 2048 }
 0x17e   :  { %p507_p7 = scmp.ne.s32.totalorder %s712_s2, %s506_s18  ;;  %p510_p8 = scmp.lt.u32.totalorder %s506_s18, %s712_s2 }
 0x180   :  { %p512_p9 = pnand %p510_p8, %p507_p7 }
 0x182   :  { %515 = shalt.err (!%p512_p9)
}
 0x183   :  { %398 = dma.vmem_to_hbm [thread:$0]  %s393_s14, 2048, %s712_s2, [#allocation5], %s523_s22, %s523_s22, %s524_s23  }
 0x184   :  { %520 = dma.done.wait [#allocation5], 2048  }
 0x185   :  { %521 = vsyncadd [#allocation5], 4294965248 }
 0x186   :  { %406 = vsyncpa [#allocation4], 1 }
 0x187   :  { %407 = vsyncpa [#allocation7], 1 }
 0x188   :  { %408 = vsyncpa [#allocation5], 1 }

</bundles_post_ra>
